<compile_context>
chip_gen: v7x
topology: tpu7x:2x2x1
jax: 0.10.0
libtpu: 0.0.40
codegen_flags: <defaults>
</compile_context>

<pallas_src>
import functools

import jax
import jax.numpy as jnp
from jax.experimental import pallas as pl
from jax.experimental.pallas import tpu as pltpu


# ---------------------------------------------------------------------------
# Feature probe: single-buffering of grid-invariant inputs.
# ---------------------------------------------------------------------------
def _probe_kernel(x_ref, o_ref):
    o_ref[...] = x_ref[...] + 1.0


@functools.lru_cache(maxsize=None)
def _single_buffer_supported():
    """True if this Pallas build honors `pipeline_mode=pl.Buffered(1)`."""
    if not hasattr(pl, "Buffered"):
        return False
    try:
        spec = pl.BlockSpec((8, 128), lambda i: (0, 0), pipeline_mode=pl.Buffered(1))
        fn = pl.pallas_call(
            _probe_kernel,
            out_shape=jax.ShapeDtypeStruct((8, 128), jnp.float32),
            grid_spec=pltpu.PrefetchScalarGridSpec(
                num_scalar_prefetch=0,
                grid=(1,),
                in_specs=[spec],
                out_specs=pl.BlockSpec((8, 128), lambda i: (0, 0)),
            ),
        )
        jax.block_until_ready(fn(jnp.zeros((8, 128), jnp.float32)))
        return True
    except Exception:  # depends on the installed jax version
        return False


def _const_spec(shape):
    """BlockSpec for a grid-invariant operand (same block at every grid step)."""
    if _single_buffer_supported():
        return pl.BlockSpec(shape, lambda i: (0, 0), pipeline_mode=pl.Buffered(1))
    return pl.BlockSpec(shape, lambda i: (0, 0))


# ---------------------------------------------------------------------------
# Kernel
# ---------------------------------------------------------------------------
def _pp_head_kernel(enc_ref, pbv_ref, wvT_ref, we_ref, be_ref,
                    woutT_ref, bout_ref, out_ref, t_ref, g_ref, *, tb, p, n_max):
    """PP_layer + output Linear for a batch tile of TB examples.

    enc_ref  : (TB*P, D)      compute dtype   flattened batch tile of enc_output
    pbv_ref  : (P, D)         f32             positional prior w0@Emb + b0 + bv
    wvT_ref  : (D, D)         compute dtype   wv.T
    we_ref   : (N_max, D)     compute dtype   we (LHS of the merged NT score matmul)
    be_ref   : (N_max, 1)     f32             we bias (added once; it cancels under
                                              softmax, kept for faithfulness)
    woutT_ref: (D, C_pad)     compute dtype   wout.T zero-padded to a lane multiple
    bout_ref : (1, C_pad)     f32             bout zero-padded
    out_ref  : (TB*N_max, C_pad)              logits
    t_ref    : (TB*P, D)      compute dtype   VMEM scratch: tanh(enc@wvT + prior)
    g_ref    : (TB*N_max, D)  compute dtype   VMEM scratch: attention output
    """
    # 1) Shared-weight matmul over the whole batch tile (big-M MXU work).
    #    Operands stay in their storage dtype (bf16-able); accumulate in f32.
    xw = jnp.dot(enc_ref[...], wvT_ref[...], preferred_element_type=jnp.float32)

    pbv = pbv_ref[...]                                           # (P, D) f32

    # 2) Positional prior + tanh, per sample.  Static slice starts; results go
    #    straight into VMEM scratch (no Python list / jnp.concatenate).
    for b in range(tb):
        seg = slice(b * p, (b + 1) * p)
        t_ref[seg, :] = jnp.tanh(xw[seg, :] + pbv).astype(t_ref.dtype)

    # 3) Merged score matmul for the whole tile (one NT dot, M=N_max amortised
    #    over TB samples); `+ be` added exactly once.
    #    s_all[n, b*P + q] = sum_d we[n, d] * t[b*P + q, d] + be[n]
    s_all = jax.lax.dot_general(
        we_ref[...], t_ref[...], (((1,), (1,)), ((), ())),
        preferred_element_type=jnp.float32) + be_ref[...]        # (N_max, TB*P)

    # 4) Per-sample softmax over n_position (lane-axis reduction) + attention.
    for b in range(tb):
        seg = slice(b * p, (b + 1) * p)
        s_b = s_all[:, seg]                                      # (N_max, P)
        m_b = jnp.max(s_b, axis=-1, keepdims=True)
        e_b = jnp.exp(s_b - m_b)
        denom = jnp.sum(e_b, axis=-1, keepdims=True)
        attn_b = e_b * pl.reciprocal(denom, approx=True)         # (N_max, P) f32

        # g_b = attn_b @ enc_b : (N_max, P) @ (P, D), f32 accumulation.
        g_b = jnp.dot(attn_b.astype(g_ref.dtype), enc_ref[seg, :],
                      preferred_element_type=jnp.float32)
        g_ref[b * n_max:(b + 1) * n_max, :] = g_b.astype(g_ref.dtype)

    # 5) Output head as one big-M, lane-dense matmul: (TB*N_max, D) @ (D, C_pad).
    logits = jnp.dot(g_ref[...], woutT_ref[...],
                     preferred_element_type=jnp.float32) + bout_ref[...]
    out_ref[...] = logits.astype(out_ref.dtype)


# ---------------------------------------------------------------------------
# Wrapper
# ---------------------------------------------------------------------------
def _default_batch_tile(batch):
    """TB that divides B (no padding), <= 8, and leaves >= 2 grid steps when
    possible (so both v7x TensorCores get work on the 'parallel' axis)."""
    for d in range(min(batch, 8), 0, -1):
        if batch % d == 0 and batch // d >= 2:
            return d
    return min(batch, 8)


def _pp_head_pallas(enc, pp_params, head_params, *, batch_tile=None,
                    compute_dtype=None, vmem_limit_bytes=48 * 1024 * 1024):
    """Run PP_layer (params `pp_params`) then the Linear head `head_params`."""
    B, P, D = enc.shape
    out_dtype = enc.dtype
    emb, w0, b0, wv, bv, we, be = pp_params
    wout, bout = head_params
    N_max = we.shape[0]
    n_class = wout.shape[0]
    C_pad = ((n_class + 127) // 128) * 128      # lane-dense (unmasked) output stores

    cdtype = jnp.dtype(compute_dtype) if compute_dtype is not None else jnp.dtype(enc.dtype)

    TB = batch_tile if batch_tile is not None else _default_batch_tile(B)
    n_tiles = pl.cdiv(B, TB)
    B_pad = n_tiles * TB

    # ---- batch-independent precompute (one-time XLA work, kept in f32) ------
    #   prior = w0 @ Emb + b0[:, None]; fold in the wv bias: pbv = prior + bv
    f32 = jnp.float32
    prior = jnp.dot(w0.astype(f32), emb.astype(f32),
                    preferred_element_type=f32) + b0.astype(f32)[:, None]
    pbv = prior + bv.astype(f32)[None, :]                        # (P, D) f32
    wvT = wv.T.astype(cdtype)                                    # (D, D)
    we_c = we.astype(cdtype)                                     # (N_max, D)
    be_col = be.reshape(N_max, 1).astype(f32)                    # (N_max, 1)
    # NOTE: for very large charsets, block woutT along C with a second grid
    # axis instead of keeping the whole padded matrix resident.
    woutT = jnp.zeros((D, C_pad), cdtype).at[:, :n_class].set(wout.T.astype(cdtype))
    bout_row = jnp.zeros((1, C_pad), f32).at[:, :n_class].set(bout.astype(f32))

    # Present enc as a 2-D slab so the kernel needs no reshapes; pad the batch
    # only when an explicit batch_tile does not divide B.
    enc_c = enc.astype(cdtype)
    if B_pad != B:
        enc_c = jnp.pad(enc_c, ((0, B_pad - B), (0, 0), (0, 0)))
    enc2 = enc_c.reshape(B_pad * P, D)

    kernel = functools.partial(_pp_head_kernel, tb=TB, p=P, n_max=N_max)

    out2 = pl.pallas_call(
        kernel,
        out_shape=jax.ShapeDtypeStruct((B_pad * N_max, C_pad), out_dtype),
        grid_spec=pltpu.PrefetchScalarGridSpec(
            num_scalar_prefetch=0,
            grid=(n_tiles,),
            in_specs=[
                pl.BlockSpec((TB * P, D), lambda i: (i, 0)),     # enc batch tile
                _const_spec((P, D)),                             # pbv
                _const_spec((D, D)),                             # wvT
                _const_spec((N_max, D)),                         # we
                _const_spec((N_max, 1)),                         # be
                _const_spec((D, C_pad)),                         # woutT (padded)
                _const_spec((1, C_pad)),                         # bout  (padded)
            ],
            out_specs=pl.BlockSpec((TB * N_max, C_pad), lambda i: (i, 0)),
            scratch_shapes=[
                pltpu.VMEM((TB * P, D), cdtype),                 # t = tanh(...)
                pltpu.VMEM((TB * N_max, D), cdtype),             # attention output g
            ],
        ),
        compiler_params=pltpu.CompilerParams(
            dimension_semantics=("parallel",),
            vmem_limit_bytes=vmem_limit_bytes,
        ),
    )(enc2, pbv, wvT, we_c, be_col, woutT, bout_row)

    # Strip the class padding and any batch padding; restore (B, N_max, n_class).
    return out2[: B * N_max, :n_class].reshape(B, N_max, n_class)


def prediction_forward(params, cnn_feature, f_res=None, f_sub=None,
                       is_Train=False, use_mlm=True, **kwargs):
    """Mirrors Prediction.forward."""
    pp, pp_share, w_vrm, w_share = (params["pp"], params["pp_share"],
                                    params["w_vrm"], params["w_share"])
    if is_Train:
        if not use_mlm:
            return _pp_head_pallas(cnn_feature, pp, w_vrm, **kwargs), 0, 0
        g_output = _pp_head_pallas(cnn_feature, pp, w_vrm, **kwargs)
        f_res_o = _pp_head_pallas(f_res, pp_share, w_share, **kwargs)
        f_sub_o = _pp_head_pallas(f_sub, pp_share, w_share, **kwargs)
        return g_output, f_res_o, f_sub_o
    return _pp_head_pallas(cnn_feature, pp, w_vrm, **kwargs)


# ---------------------------------------------------------------------------
# Pure-JAX reference (direct transcription of the PyTorch code) for checking.
# ---------------------------------------------------------------------------
def _pp_layer_ref(enc, pp_params):
    emb, w0, b0, wv, bv, we, be = pp_params
    B = enc.shape[0]
    N_max = emb.shape[0]
    reading_order = jnp.broadcast_to(emb[None], (B, N_max, emb.shape[1]))
    t = jnp.einsum("bdn,pn->bdp", jnp.transpose(reading_order, (0, 2, 1)), w0) + b0
    t = jnp.tanh(jnp.transpose(t, (0, 2, 1)) + jnp.einsum("bpd,ed->bpe", enc, wv) + bv)
    t = jnp.einsum("bpd,nd->bpn", t, we) + be
    t = jax.nn.softmax(jnp.transpose(t, (0, 2, 1)), axis=2)
    return jnp.einsum("bnp,bpd->bnd", t, enc)


def _ref_forward(pp_params, head_params, x):
    g = _pp_layer_ref(x, pp_params)
    w, b = head_params
    return jnp.einsum("bnd,cd->bnc", g, w) + b


# ---------------------------------------------------------------------------
def _init_pp_params(key, n_dim, N_max, n_position):
    ks = jax.random.split(key, 7)
    scale = 0.05
    emb = scale * jax.random.normal(ks[0], (N_max, n_dim), jnp.float32)
    w0 = scale * jax.random.normal(ks[1], (n_position, N_max), jnp.float32)
    b0 = scale * jax.random.normal(ks[2], (n_position,), jnp.float32)
    wv = scale * jax.random.normal(ks[3], (n_dim, n_dim), jnp.float32)
    bv = scale * jax.random.normal(ks[4], (n_dim,), jnp.float32)
    we = scale * jax.random.normal(ks[5], (N_max, n_dim), jnp.float32)
    be = scale * jax.random.normal(ks[6], (N_max,), jnp.float32)
    return (emb, w0, b0, wv, bv, we, be)


def _init_head(key, n_dim, n_class):
    k1, k2 = jax.random.split(key)
    w = 0.05 * jax.random.normal(k1, (n_class, n_dim), jnp.float32)
    b = 0.05 * jax.random.normal(k2, (n_class,), jnp.float32)
    return (w, b)


if __name__ == "__main__":
    # Small shapes consistent with the module's forward:
    B, n_dim, n_class, N_max, n_position = 2, 32, 16, 8, 16

    key = jax.random.PRNGKey(0)
    k_pp, k_pps, k_vrm, k_share, k_x, k_r, k_s = jax.random.split(key, 7)

    params = {
        "pp": _init_pp_params(k_pp, n_dim, N_max, n_position),
        "pp_share": _init_pp_params(k_pps, n_dim, N_max, n_position),
        "w_vrm": _init_head(k_vrm, n_dim, n_class),
        "w_share": _init_head(k_share, n_dim, n_class),
    }

    cnn_feature = jax.random.normal(k_x, (B, n_position, n_dim), jnp.float32)
    f_res = jax.random.normal(k_r, (B, n_position, n_dim), jnp.float32)
    f_sub = jax.random.normal(k_s, (B, n_position, n_dim), jnp.float32)

    ref_main = _ref_forward(params["pp"], params["w_vrm"], cnn_feature)
    ref_res = _ref_forward(params["pp_share"], params["w_share"], f_res)
    ref_sub = _ref_forward(params["pp_share"], params["w_share"], f_sub)

    # Eval path, default tiling (TB divides B, >= 2 grid steps).
    g_out = jax.block_until_ready(prediction_forward(params, cnn_feature))
    assert g_out.shape == (B, N_max, n_class)
    assert jnp.allclose(g_out, ref_main, atol=1e-3, rtol=1e-3), "mismatch (default tile)"

    # Whole batch in one tile: exercises the in-kernel multi-sample loops and
    # the merged (N_max, TB*P) score matmul.
    g_out_tb = jax.block_until_ready(
        prediction_forward(params, cnn_feature, batch_tile=B))
    assert jnp.allclose(g_out_tb, ref_main, atol=1e-3, rtol=1e-3), "mismatch (TB=B)"

    # Training path (three PP+head invocations through the same kernel).
    g_tr, r_tr, s_tr = prediction_forward(params, cnn_feature, f_res, f_sub,
                                          is_Train=True, use_mlm=True)
    jax.block_until_ready((g_tr, r_tr, s_tr))
    assert jnp.allclose(g_tr, ref_main, atol=1e-3, rtol=1e-3)
    assert jnp.allclose(r_tr, ref_res, atol=1e-3, rtol=1e-3)
    assert jnp.allclose(s_tr, ref_sub, atol=1e-3, rtol=1e-3)

    # bf16 matmul operands with f32 accumulation (fast path on v6e/v7x).
    g_bf16 = jax.block_until_ready(
        prediction_forward(params, cnn_feature, batch_tile=B,
                           compute_dtype=jnp.bfloat16))
    assert jnp.allclose(g_bf16.astype(jnp.float32), ref_main,
                        atol=5e-2, rtol=5e-2), "mismatch (bf16 compute)"

    print("KERNEL_OK")
</pallas_src>

<mosaic_0001>
module attributes {stable_mosaic.version = 11 : i64} {
  func.func @_probe_kernel(%arg0: i32, %arg1: memref<8x128xf32, #tpu.memory_space<vmem>>, %arg2: memref<8x128xf32, #tpu.memory_space<vmem>>) attributes {dimension_semantics = [#tpu.dimension_semantics<arbitrary>], iteration_bounds = array<i64: 1>, scalar_prefetch = 0 : i64, scratch_operands = 0 : i64, tpu.core_type = #tpu.core_type<tc>, window_params = [{pipeline_mode = #tpu.pipeline_mode<synchronous>, transform_indices = @transform_0, window_bounds = array<i64: 8, 128>}, {pipeline_mode = #tpu.pipeline_mode<synchronous>, transform_indices = @transform_1, window_bounds = array<i64: 8, 128>}]} {
    %c0 = arith.constant 0 : index
    %c0_0 = arith.constant 0 : index
    %0 = vector.load %arg1[%c0, %c0_0] : memref<8x128xf32, #tpu.memory_space<vmem>>, vector<8x128xf32>
    %cst = arith.constant 1.000000e+00 : f32
    %1 = vector.broadcast %cst : f32 to vector<8x128xf32>
    %2 = arith.addf %0, %1 : vector<8x128xf32>
    %c0_1 = arith.constant 0 : index
    %c0_2 = arith.constant 0 : index
    %3 = vector.load %arg2[%c0_1, %c0_2] : memref<8x128xf32, #tpu.memory_space<vmem>>, vector<8x128xf32>
    tpu.vector_store %arg2[%c0_1, %c0_2], %2 {strides = array<i32>} : memref<8x128xf32, #tpu.memory_space<vmem>>, vector<8x128xf32>,
    return
  }
  func.func @transform_0(%arg0: i32) -> (i32, i32) {
    %c0_i32 = arith.constant 0 : i32
    %c0_i32_0 = arith.constant 0 : i32
    %c0_i32_1 = arith.constant 0 : i32
    return %c0_i32, %c0_i32_0 : i32, i32
  }
  func.func @transform_1(%arg0: i32) -> (i32, i32) {
    %c0_i32 = arith.constant 0 : i32
    %c0_i32_0 = arith.constant 0 : i32
    %c0_i32_1 = arith.constant 0 : i32
    return %c0_i32, %c0_i32_0 : i32, i32
  }
}

module attributes {stable_mosaic.version = 11 : i64} {
  func.func @_pp_head_kernel(%arg0: i32, %arg1: memref<16x32xf32, #tpu.memory_space<vmem>>, %arg2: memref<16x32xf32, #tpu.memory_space<vmem>>, %arg3: memref<32x32xf32, #tpu.memory_space<vmem>>, %arg4: memref<8x32xf32, #tpu.memory_space<vmem>>, %arg5: memref<8x1xf32, #tpu.memory_space<vmem>>, %arg6: memref<32x128xf32, #tpu.memory_space<vmem>>, %arg7: memref<1x128xf32, #tpu.memory_space<vmem>>, %arg8: memref<8x128xf32, #tpu.memory_space<vmem>>, %arg9: memref<16x32xf32, #tpu.memory_space<vmem>>, %arg10: memref<8x32xf32, #tpu.memory_space<vmem>>) attributes {dimension_semantics = [#tpu.dimension_semantics<parallel>], iteration_bounds = array<i64: 2>, scalar_prefetch = 0 : i64, scratch_operands = 2 : i64, tpu.core_type = #tpu.core_type<tc>, window_params = [{transform_indices = @transform_0, window_bounds = array<i64: 16, 32>}, {pipeline_mode = #tpu.pipeline_mode<synchronous>, transform_indices = @transform_1, window_bounds = array<i64: 16, 32>}, {pipeline_mode = #tpu.pipeline_mode<synchronous>, transform_indices = @transform_2, window_bounds = array<i64: 32, 32>}, {pipeline_mode = #tpu.pipeline_mode<synchronous>, transform_indices = @transform_3, window_bounds = array<i64: 8, 32>}, {pipeline_mode = #tpu.pipeline_mode<synchronous>, transform_indices = @transform_4, window_bounds = array<i64: 8, 1>}, {pipeline_mode = #tpu.pipeline_mode<synchronous>, transform_indices = @transform_5, window_bounds = array<i64: 32, 128>}, {pipeline_mode = #tpu.pipeline_mode<synchronous>, transform_indices = @transform_6, window_bounds = array<i64: 1, 128>}, {transform_indices = @transform_7, window_bounds = array<i64: 8, 128>}]} {
    %c0 = arith.constant 0 : index
    %c0_0 = arith.constant 0 : index
    %0 = vector.load %arg1[%c0, %c0_0] : memref<16x32xf32, #tpu.memory_space<vmem>>, vector<16x32xf32>
    %c0_1 = arith.constant 0 : index
    %c0_2 = arith.constant 0 : index
    %1 = vector.load %arg3[%c0_1, %c0_2] : memref<32x32xf32, #tpu.memory_space<vmem>>, vector<32x32xf32>
    %cst = arith.constant dense<0.000000e+00> : vector<16x32xf32>
    %2 = tpu.matmul %0, %1, %cst {dimension_numbers = #tpu.dot_dimension_numbers<[1], [0], [0], [1], [0, 0, 1, 1], [], []>} : vector<16x32xf32>, vector<32x32xf32>, vector<16x32xf32> -> vector<16x32xf32>
    %c0_3 = arith.constant 0 : index
    %c0_4 = arith.constant 0 : index
    %3 = vector.load %arg2[%c0_3, %c0_4] : memref<16x32xf32, #tpu.memory_space<vmem>>, vector<16x32xf32>
    %4 = arith.addf %2, %3 : vector<16x32xf32>
    %5 = math.tanh %4 : vector<16x32xf32>
    %c0_5 = arith.constant 0 : index
    %c0_6 = arith.constant 0 : index
    %6 = vector.load %arg9[%c0_5, %c0_6] : memref<16x32xf32, #tpu.memory_space<vmem>>, vector<16x32xf32>
    tpu.vector_store %arg9[%c0_5, %c0_6], %5 {strides = array<i32>} : memref<16x32xf32, #tpu.memory_space<vmem>>, vector<16x32xf32>,
    %c0_7 = arith.constant 0 : index
    %c0_8 = arith.constant 0 : index
    %7 = vector.load %arg4[%c0_7, %c0_8] : memref<8x32xf32, #tpu.memory_space<vmem>>, vector<8x32xf32>
    %c0_9 = arith.constant 0 : index
    %c0_10 = arith.constant 0 : index
    %8 = vector.load %arg9[%c0_9, %c0_10] : memref<16x32xf32, #tpu.memory_space<vmem>>, vector<16x32xf32>
    %cst_11 = arith.constant dense<0.000000e+00> : vector<8x16xf32>
    %9 = tpu.matmul %7, %8, %cst_11 {dimension_numbers = #tpu.dot_dimension_numbers<[1], [1], [0], [0], [0, 0, 1, 0], [], []>} : vector<8x32xf32>, vector<16x32xf32>, vector<8x16xf32> -> vector<8x16xf32>
    %c0_12 = arith.constant 0 : index
    %c0_13 = arith.constant 0 : index
    %10 = vector.load %arg5[%c0_12, %c0_13] : memref<8x1xf32, #tpu.memory_space<vmem>>, vector<8x1xf32>
    %11 = vector.broadcast %10 : vector<8x1xf32> to vector<8x16xf32>
    %12 = arith.addf %9, %11 : vector<8x16xf32>
    %cst_14 = arith.constant dense<0xFF800000> : vector<8xf32>
    %13 = vector.multi_reduction <maximumf>, %12, %cst_14 [1] : vector<8x16xf32> to vector<8xf32>
    %14 = vector.shape_cast %13 : vector<8xf32> to vector<8x1xf32>
    %15 = vector.broadcast %14 : vector<8x1xf32> to vector<8x16xf32>
    %16 = arith.subf %12, %15 : vector<8x16xf32>
    %17 = math.exp %16 : vector<8x16xf32>
    %cst_15 = arith.constant dense<0.000000e+00> : vector<8xf32>
    %18 = vector.multi_reduction <add>, %17, %cst_15 [1] : vector<8x16xf32> to vector<8xf32>
    %19 = vector.shape_cast %18 : vector<8xf32> to vector<8x1xf32>
    %20 = tpu.reciprocal %19 {approx = true} : vector<8x1xf32> -> vector<8x1xf32>
    %21 = vector.broadcast %20 : vector<8x1xf32> to vector<8x16xf32>
    %22 = arith.mulf %17, %21 : vector<8x16xf32>
    %c0_16 = arith.constant 0 : index
    %c0_17 = arith.constant 0 : index
    %23 = vector.load %arg1[%c0_16, %c0_17] : memref<16x32xf32, #tpu.memory_space<vmem>>, vector<16x32xf32>
    %cst_18 = arith.constant dense<0.000000e+00> : vector<8x32xf32>
    %24 = tpu.matmul %22, %23, %cst_18 {dimension_numbers = #tpu.dot_dimension_numbers<[1], [0], [0], [1], [0, 0, 1, 1], [], []>} : vector<8x16xf32>, vector<16x32xf32>, vector<8x32xf32> -> vector<8x32xf32>
    %c0_19 = arith.constant 0 : index
    %c0_20 = arith.constant 0 : index
    %25 = vector.load %arg10[%c0_19, %c0_20] : memref<8x32xf32, #tpu.memory_space<vmem>>, vector<8x32xf32>
    tpu.vector_store %arg10[%c0_19, %c0_20], %24 {strides = array<i32>} : memref<8x32xf32, #tpu.memory_space<vmem>>, vector<8x32xf32>,
    %c0_21 = arith.constant 0 : index
    %c0_22 = arith.constant 0 : index
    %26 = vector.load %arg10[%c0_21, %c0_22] : memref<8x32xf32, #tpu.memory_space<vmem>>, vector<8x32xf32>
    %c0_23 = arith.constant 0 : index
    %c0_24 = arith.constant 0 : index
    %27 = vector.load %arg6[%c0_23, %c0_24] : memref<32x128xf32, #tpu.memory_space<vmem>>, vector<32x128xf32>
    %cst_25 = arith.constant dense<0.000000e+00> : vector<8x128xf32>
    %28 = tpu.matmul %26, %27, %cst_25 {dimension_numbers = #tpu.dot_dimension_numbers<[1], [0], [0], [1], [0, 0, 1, 1], [], []>} : vector<8x32xf32>, vector<32x128xf32>, vector<8x128xf32> -> vector<8x128xf32>
    %c0_26 = arith.constant 0 : index
    %c0_27 = arith.constant 0 : index
    %29 = vector.load %arg7[%c0_26, %c0_27] : memref<1x128xf32, #tpu.memory_space<vmem>>, vector<1x128xf32>
    %30 = vector.broadcast %29 : vector<1x128xf32> to vector<8x128xf32>
    %31 = arith.addf %28, %30 : vector<8x128xf32>
    %c0_28 = arith.constant 0 : index
    %c0_29 = arith.constant 0 : index
    %32 = vector.load %arg8[%c0_28, %c0_29] : memref<8x128xf32, #tpu.memory_space<vmem>>, vector<8x128xf32>
    tpu.vector_store %arg8[%c0_28, %c0_29], %31 {strides = array<i32>} : memref<8x128xf32, #tpu.memory_space<vmem>>, vector<8x128xf32>,
    return
  }
  func.func @transform_0(%arg0: i32) -> (i32, i32) {
    %c0_i32 = arith.constant 0 : i32
    %c0_i32_0 = arith.constant 0 : i32
    return %arg0, %c0_i32 : i32, i32
  }
  func.func @transform_1(%arg0: i32) -> (i32, i32) {
    %c0_i32 = arith.constant 0 : i32
    %c0_i32_0 = arith.constant 0 : i32
    %c0_i32_1 = arith.constant 0 : i32
    return %c0_i32, %c0_i32_0 : i32, i32
  }
  func.func @transform_2(%arg0: i32) -> (i32, i32) {
    %c0_i32 = arith.constant 0 : i32
    %c0_i32_0 = arith.constant 0 : i32
    %c0_i32_1 = arith.constant 0 : i32
    return %c0_i32, %c0_i32_0 : i32, i32
  }
  func.func @transform_3(%arg0: i32) -> (i32, i32) {
    %c0_i32 = arith.constant 0 : i32
    %c0_i32_0 = arith.constant 0 : i32
    %c0_i32_1 = arith.constant 0 : i32
    return %c0_i32, %c0_i32_0 : i32, i32
  }
  func.func @transform_4(%arg0: i32) -> (i32, i32) {
    %c0_i32 = arith.constant 0 : i32
    %c0_i32_0 = arith.constant 0 : i32
    %c0_i32_1 = arith.constant 0 : i32
    return %c0_i32, %c0_i32_0 : i32, i32
  }
  func.func @transform_5(%arg0: i32) -> (i32, i32) {
    %c0_i32 = arith.constant 0 : i32
    %c0_i32_0 = arith.constant 0 : i32
    %c0_i32_1 = arith.constant 0 : i32
    return %c0_i32, %c0_i32_0 : i32, i32
  }
  func.func @transform_6(%arg0: i32) -> (i32, i32) {
    %c0_i32 = arith.constant 0 : i32
    %c0_i32_0 = arith.constant 0 : i32
    %c0_i32_1 = arith.constant 0 : i32
    return %c0_i32, %c0_i32_0 : i32, i32
  }
  func.func @transform_7(%arg0: i32) -> (i32, i32) {
    %c0_i32 = arith.constant 0 : i32
    %c0_i32_0 = arith.constant 0 : i32
    return %arg0, %c0_i32 : i32, i32
  }
}

</mosaic_0001>

<bundles_post_ra>
// kernel: tpu_custom_call.1
= control target key start
LH: loop header
LB: loop body
LE: loop exit
PB: predicated region body
PF: predicated region fallthrough
CT: control target
= control target key end

     0   :  { %6 = vsyncpa [#allocation3], 0  ;;  %s125_s0 = inlined_call_operand.hbm [shape: f32[8,128], index: 0, kind: input, shape index: {}]   ;;  %s126_s1 = inlined_call_operand.hbm [shape: f32[8,128], index: 1, kind: output, shape index: {}]  }
   0x1   :  { %7 = vsyncpa [#allocation4], 0  ;;  %s89_s6 = smov [#allocation2]   ;;  %s41_s10 = scalar_lea.hbm %s125_s0, 128 }
   0x2   :  { %s14_s7 = sshll.u32 %s89_s6, 4  ;;  %p42_p0 = scmp.ne.s32.totalorder %s125_s0, %s41_s10  ;;  %s15_s7 = int_to_ptr.vmem [resolvable:$true] %s14_s7 }
   0x3   :  { %p45_p1 = scmp.lt.u32.totalorder %s41_s10, %s125_s0 }
   0x5   :  { %p47_p2 = pnand %p45_p1, %p42_p0 }
   0x7   :  { %50 = shalt.err (!%p47_p2)
}
   0x8   :  { %s51_s15 = scalar_lea.vmem %s15_s7, 128  ;;  %p56_p4 = scmp.lt.s32.totalorder %s15_s7, %s15_s7 }
   0x9   :  { %p52_p3 = scmp.ne.s32.totalorder %s15_s7, %s51_s15  ;;  %p57_p5 = scmp.lt.s32.totalorder %s51_s15, %s51_s15 }
   0xb   :  { %p58_p6 = por %p57_p5, %p56_p4 }
   0xd   :  { %p59_p7 = pnand %p58_p6, %p52_p3 }
   0xf   :  { %62 = shalt.err (!%p59_p7)
}
  0x10   :  { %17 = dma.hbm_to_vmem [thread:$0]  %s125_s0, 128, %s15_s7, [#allocation3]  }
  0x11   :  { %85 = dma.done.wait [#allocation3], 128  }
  0x12   :  { %86 = vsyncadd [#allocation3], 4294967168  ;;  %s90_s18 = smov [#allocation5]   ;;  %v21_v0 = vld [vmem:[#allocation2] sm:$0xff] }
  0x13   :  { %s30_s19 = sshll.u32 %s90_s18, 4  ;;  %v22_v1 = vadd.f32 1.0, %v21_v0  ;;  %s31_s19 = int_to_ptr.vmem [resolvable:$true] %s30_s19 }
  0x14   :  { %s63_s20 = scalar_lea.vmem %s31_s19, 128  ;;  %p68_p9 = scmp.lt.s32.totalorder %s31_s19, %s31_s19 }
  0x15   :  { %23 = vst [vmem:[#allocation5] sm:$0xff] %v22_v1  ;;  %p64_p8 = scmp.ne.s32.totalorder %s31_s19, %s63_s20  ;;  %p69_p10 = scmp.lt.s32.totalorder %s63_s20, %s63_s20 }
  0x17   :  { %p70_p11 = por %p69_p10, %p68_p9 }
  0x19   :  { %p71_p12 = pnand %p70_p11, %p64_p8 }
  0x1b   :  { %74 = shalt.err (!%p71_p12)
}
  0x1c   :  { %s75_s23 = scalar_lea.hbm %s126_s1, 128 }
  0x1d   :  { %p76_p13 = scmp.ne.s32.totalorder %s126_s1, %s75_s23  ;;  %p79_p0 = scmp.lt.u32.totalorder %s75_s23, %s126_s1 }
  0x1f   :  { %p81_p1 = pnand %p79_p0, %p76_p13 }
  0x21   :  { %84 = shalt.err (!%p81_p1)
}
  0x22   :  { %33 = dma.vmem_to_hbm [thread:$0]  %s31_s19, 128, %s126_s1, [#allocation4]  }
  0x23   :  { %87 = dma.done.wait [#allocation4], 128  }
  0x24   :  { %88 = vsyncadd [#allocation4], 4294967168 }
  0x25   :  { %37 = vsyncpa [#allocation3], 1 }
  0x26   :  { %38 = vsyncpa [#allocation4], 1 }

// kernel: tpu_custom_call.1
= control target key start
LH: loop header
LB: loop body
LE: loop exit
PB: predicated region body
PF: predicated region fallthrough
CT: control target
= control target key end

     0   :  { %12 = vsyncpa [#allocation5], 0  ;;  %s1540_s0 = inlined_call_operand.hbm [shape: f32[32,32], index: 0, kind: input, shape index: {}]   ;;  %s1541_s1 = inlined_call_operand.hbm [shape: f32[16,32], index: 1, kind: input, shape index: {}]   ;;  %s1542_s2 = inlined_call_operand.hbm [shape: f32[32,32], index: 2, kind: input, shape index: {}]   ;;  %s1543_s3 = inlined_call_operand.vmem [shape: f32[8,32], index: 3, kind: input, shape index: {}]   ;;  %s1544_s4 = inlined_call_operand.vmem [shape: f32[8,1], index: 4, kind: input, shape index: {}]   ;;  %s1545_s5 = inlined_call_operand.hbm [shape: f32[32,128], index: 5, kind: input, shape index: {}]   ;;  %s1546_s6 = inlined_call_operand.vmem [shape: f32[1,128], index: 6, kind: input, shape index: {}]   ;;  %s1547_s7 = inlined_call_operand.hbm [shape: f32[16,128], index: 7, kind: output, shape index: {}]  }
   0x1   :  { %14 = vsyncpa [#allocation5 + $0x1], 0 }
   0x2   :  { %15 = vsyncpa [#allocation8], 0 }
   0x3   :  { %16 = vsyncpa [#allocation11], 0 }
   0x4   :  { %17 = vsyncpa [#allocation6], 0 }
   0x5   :  { %19 = vsyncpa [#allocation6 + $0x1], 0  ;;  %s1246_s24 = smov 0   ;;  %s1248_s25 = smov 0  }
   0x6   :  { %s1250_s26 = smov 0   ;;  %s1252_s27 = smov 0  }
   0x7 LB: > { %s1267_s28 = sadd.s32 4294967295, %s1193_s27   ;;  %s811_s29 = sadd.s32 4294967294, %s1193_s27   ;;  %s1193_s27 = sphi %s1252_s27, %s1573_s27   ;;  %s1189_s26 = sphi %s1250_s26, %s1572_s26   ;;  %s1185_s25 = sphi %s1248_s25, %s1571_s25   ;;  %s1181_s24 = sphi %s1246_s24, %s1570_s24  }
   0x8   : > { %p45_p0 = scmp.ne.s32.totalorder %s1185_s25, %s1181_s24  ;;  %p1548_p1 = scmp.eq.s32.totalorder %s1267_s28, 0 }
   0x9   : > { %p201_p3 = scmp.eq.s32.totalorder %s811_s29, 1  ;;  %p812_p5 = scmp.ge.s32.totalorder %s1193_s27, 1 }
   0xa   : > { %p1276_p4 = por %p1548_p1, %p45_p0  ;;  %p208_p7 = scmp.lt.s32.totalorder %s1193_s27, 3 }
   0xb   : > { %p1281_p6 = por %p201_p3, %p45_p0  ;;  %s1195_s10 = smov [#allocation7]  }
   0xc   : > { %s1552_s30 = scalar_select %p1276_p4, 1, 0 }
   0xd   : > { %s1553_s8 = scalar_select %p1281_p6, 1, 0 }
   0xe   : > { %p1286_p8 = pnand %p812_p5, %p208_p7  ;;  %s220_s11 = sshll.u32 %s1195_s10, 4  ;;  %s1290_s11 = int_to_ptr.vmem [resolvable:$true] %s220_s11 }
   0xf   : > { %1554 = sst [smem:[#allocation17_spill]] %s1553_s8  ;;  %s1196_s13 = smov [#allocation9]  }
  0x10   : > { %s1555_s9 = scalar_select %p1286_p8, 1, 0 }
  0x11   : > { %p929_p9 = pneg %p1286_p8  ;;  %s233_s14 = sshll.u32 %s1196_s13, 4  ;;  %s1301_s14 = int_to_ptr.vmem [resolvable:$true] %s233_s14 }
  0x12   : > { %s1197_s15 = smov [#allocation10]   ;;  %s1005_s19 = scalar_lea.hbm %s1541_s1, 256 }
  0x13   : > { %p1297_p11 = pnand %p929_p9, %p1548_p1  ;;  %s1303_s16 = sshll.u32 %s1197_s15, 4  ;;  %s253_s16 = int_to_ptr.vmem [resolvable:$true] %s1303_s16 }
  0x14   : > { %p1006_p12 = scmp.ne.s32.totalorder %s1541_s1, %s1005_s19  ;;  %p1012_p5 = scmp.lt.u32.totalorder %s1005_s19, %s1541_s1 }
  0x15   : > { %p1313_p13 = pneg %p1297_p11 }
  0x17   : > { %p1008_p0 = pnand %p1313_p13, %p1006_p12 }
  0x19   : > { %p1009_p3 = pneg %p1008_p0 }
  0x1b   : > { %p1014_p7 = pnand %p1012_p5, %p1009_p3 }
  0x1d   : > { %1017 = shalt.err (!%p1014_p7)
}
  0x1e   : > { %s1018_s10 = scalar_lea.vmem %s1290_s11, 256  ;;  %p1026_p2 = scmp.lt.s32.totalorder %s1290_s11, %s1290_s11 }
  0x1f   : > { %p1019_p9 = scmp.ne.s32.totalorder %s1290_s11, %s1018_s10  ;;  %p1027_p6 = scmp.lt.s32.totalorder %s1018_s10, %s1018_s10 }
  0x21   : > { %p1021_p10 = pnand %p1019_p9, %p1313_p13  ;;  %p1028_p12 = por %p1027_p6, %p1026_p2 }
  0x23   : > { %p1022_p1 = pneg %p1021_p10 }
  0x25   : > { %p1029_p0 = pnand %p1028_p12, %p1022_p1 }
  0x27   : > { %1032 = shalt.err (!%p1029_p0)
}
  0x28   : > { %s1198_s13 = smov 128   ;;  %s1199_s15 = smov 8  }
  0x29   : > { %932 = dma.hbm_to_vmem [thread:$0]  (!%p1297_p11), %s1541_s1, 256, %s1290_s11, [#allocation8], %s1198_s13, %s1198_s13, %s1199_s15  }
  0x2a   : > { %s1033_s21 = scalar_lea.hbm %s1542_s2, 512 }
  0x2b   : > { %p1034_p1 = scmp.ne.s32.totalorder %s1542_s2, %s1033_s21  ;;  %p1040_p10 = scmp.lt.u32.totalorder %s1033_s21, %s1542_s2 }
  0x2d   : > { %p1036_p2 = pnand %p1034_p1, %p1313_p13 }
  0x2f   : > { %p1037_p6 = pneg %p1036_p2 }
  0x31   : > { %p1042_p3 = pnand %p1040_p10, %p1037_p6 }
  0x33   : > { %1045 = shalt.err (!%p1042_p3)
}
  0x34   : > { %s1046_s11 = scalar_lea.vmem %s1301_s14, 512  ;;  %p1054_p12 = scmp.lt.s32.totalorder %s1301_s14, %s1301_s14 }
  0x35   : > { %p1047_p5 = scmp.ne.s32.totalorder %s1301_s14, %s1046_s11  ;;  %p1055_p0 = scmp.lt.s32.totalorder %s1046_s11, %s1046_s11 }
  0x37   : > { %p1049_p7 = pnand %p1047_p5, %p1313_p13  ;;  %p1056_p1 = por %p1055_p0, %p1054_p12 }
  0x39   : > { %p1050_p9 = pneg %p1049_p7 }
  0x3b   : > { %p1057_p2 = pnand %p1056_p1, %p1050_p9 }
  0x3d   : > { %1060 = shalt.err (!%p1057_p2)
}
  0x3e   : > { %935 = dma.hbm_to_vmem [thread:$0]  (!%p1297_p11), %s1542_s2, 512, %s1301_s14, [#allocation8], %s1198_s13, %s1198_s13, %s1199_s15  }
  0x3f   : > { %s1061_s20 = scalar_lea.hbm %s1545_s5, 512 }
  0x40   : > { %p1062_p6 = scmp.ne.s32.totalorder %s1545_s5, %s1061_s20  ;;  %p1068_p5 = scmp.lt.u32.totalorder %s1061_s20, %s1545_s5 }
  0x42   : > { %p1064_p10 = pnand %p1062_p6, %p1313_p13 }
  0x44   : > { %p1065_p3 = pneg %p1064_p10 }
  0x46   : > { %p1070_p7 = pnand %p1068_p5, %p1065_p3 }
  0x48   : > { %1073 = shalt.err (!%p1070_p7)
}
  0x49   : > { %s1074_s11 = scalar_lea.vmem %s253_s16, 512  ;;  %p1082_p1 = scmp.lt.s32.totalorder %s253_s16, %s253_s16 }
  0x4a   : > { %p1075_p9 = scmp.ne.s32.totalorder %s253_s16, %s1074_s11  ;;  %p1083_p2 = scmp.lt.s32.totalorder %s1074_s11, %s1074_s11 }
  0x4c   : > { %p1077_p12 = pnand %p1075_p9, %p1313_p13  ;;  %p1084_p4 = por %p1083_p2, %p1082_p1 }
  0x4e   : > { %p1078_p0 = pneg %p1077_p12 }
  0x50   : > { %p1085_p8 = pnand %p1084_p4, %p1078_p0 }
  0x52   : > { %1088 = shalt.err (!%p1085_p8)
}
  0x53   : > { %938 = dma.hbm_to_vmem [thread:$0]  (!%p1297_p11), %s1545_s5, 512, %s253_s16, [#allocation11], %s1198_s13, %s1198_s13, %s1199_s15  }
  0x54   : > { %s1386_s22 = sadd.s32 1, %s1193_s27   ;;  %s32_s17 = sadd.s32 1, %s1189_s26 }
  0x55   : > { %s29_s12 = ssub.s32 %s1193_s27, %s1386_s22  ;;  %p39_p8 = scmp.ne.s32.totalorder %s1189_s26, %s1185_s25 }
  0x56   : > { %p30_p4 = scmp.eq.s32.totalorder %s29_s12, 0  ;;  %p40_p13 = scmp.eq.s32.totalorder %s1193_s27, 0 }
  0x57   : > { %p950_p6 = scmp.lt.s32.totalorder %s1193_s27, 2  ;;  %p1558_p3 = scmp.eq.s32.totalorder %s1267_s28, 1 }
  0x58   : > { %s1396_s18 = scalar_select %p30_p4, %s1189_s26, %s32_s17  }
  0x59   : > { %p41_p10 = por %p40_p13, %p39_p8  ;;  %p1400_p5 = por %p1558_p3, %p39_p8 }
  0x5a   : > { %s269_s20 = sand.u32 1, %s1189_s26   ;;  %s838_s21 = sshll.u32 %s1193_s27, 8 }
  0x5b   : > { %s817_s16 = sshll.u32 %s269_s20, 4  ;;  %s1409_s10 = scalar_lea.hbm %s1540_s0, %s838_s21 }
  0x5c   : > { %s273_s11 = scalar_lea.vmem [#allocation4], %s817_s16  ;;  %p1411_p11 = pnand %p950_p6, %p41_p10 }
  0x5d   : > { %s280_s14 = sshll.u32 %s273_s11, 4  ;;  %s1417_s12 = scalar_lea.sflag [#allocation5], %s269_s20  ;;  %s1415_s14 = int_to_ptr.vmem [resolvable:$true] %s280_s14 }
  0x5e   : > { %s1089_s17 = scalar_lea.hbm %s1409_s10, 256  ;;  %p1091_p9 = pneg %p1411_p11 }
  0x5f   : > { %p1090_p7 = scmp.ne.s32.totalorder %s1409_s10, %s1089_s17  ;;  %s1094_s23 = scalar_lea.hbm %s1540_s0, 512 }
  0x60   : > { %p1095_p1 = scmp.lt.u32.totalorder %s1409_s10, %s1540_s0  ;;  %p1096_p2 = scmp.lt.u32.totalorder %s1094_s23, %s1089_s17 }
  0x61   : > { %p1092_p12 = pnand %p1091_p9, %p1090_p7  ;;  %p1098_p8 = scmp.lt.u32.totalorder %s1089_s17, %s1409_s10 }
  0x62   : > { %p1097_p4 = por %p1096_p2, %p1095_p1 }
  0x63   : > { %p1093_p0 = pneg %p1092_p12 }
  0x64   : > { %p1099_p13 = por %p1098_p8, %p1097_p4 }
  0x66   : > { %p1100_p6 = pnand %p1099_p13, %p1093_p0 }
  0x68   : > { %1103 = shalt.err (!%p1100_p6)
}
  0x69   : > { %s1104_s20 = scalar_lea.vmem %s1415_s14, 256  ;;  %s1200_s21 = smov [#allocation4]  }
  0x6a   : > { %p1105_p10 = scmp.ne.s32.totalorder %s1415_s14, %s1104_s20  ;;  %s1109_s16 = sshll.u32 %s1200_s21, 4  ;;  %s1110_s16 = int_to_ptr.vmem [resolvable:$false] %s1109_s16 }
  0x6b   : > { %s1111_s29 = scalar_lea.vmem %s1110_s16, 512  ;;  %p1112_p12 = scmp.lt.s32.totalorder %s1415_s14, %s1110_s16 }
  0x6c   : > { %p1107_p3 = pnand %p1105_p10, %p1091_p9  ;;  %p1113_p1 = scmp.lt.s32.totalorder %s1111_s29, %s1104_s20 }
  0x6e   : > { %p1108_p7 = pneg %p1107_p3  ;;  %p1114_p2 = por %p1113_p1, %p1112_p12 }
  0x70   : > { %p1115_p4 = pnand %p1114_p2, %p1108_p7 }
  0x72   : > { %1118 = shalt.err (!%p1115_p4)
}
  0x73   : > { %942 = dma.hbm_to_vmem [thread:$0]  (!%p1411_p11), %s1409_s10, 256, %s1415_s14, %s1417_s12, %s1198_s13, %s1198_s13, %s1199_s15  }
  0x74   : > { %p1561_p9 = scmp.ne.s32.totalorder %s1555_s9, 0 }
  0x75   : > { %s1451_s17 = sand.u32 (!%p1561_p9), 1, %s1185_s25   ;;  %p1562_p0 = scmp.ne.s32.totalorder (!%p1561_p9), %s1552_s30, 0 }
  0x76   : > { %292 = sbr.rel (%p1561_p9) target bundleno = 1362 (0x552), region = 48  ;;  %s821_s23 = sshll.u32 (!%p1561_p9), %s1451_s17, 4 }
  0x77   : > { %s295_s11 = scalar_lea.sflag (!%p1561_p9), [#allocation5], %s1451_s17  ;;  %s298_s20 = scalar_lea.vmem (!%p1561_p9), [#allocation4], %s821_s23 }
  0x7d   : > { %1164 = dma.done.wait (%p1562_p0), %s295_s11, 256  }
  0x7e   : > { %1166 = vsyncadd (%p1562_p0), %s295_s11, 4294967040  ;;  %p1563_p8 = scmp.eq.s32.totalorder %s1267_s28, 0 }
  0x80   : > { %1168 = dma.done.wait (%p1563_p8), [#allocation8], 768   ;;  %p1564_p11 = pmov %p1563_p8 }
  0x81   : > { %p1565_p13 = pmov %p1563_p8 }
  0x82   : > { %1170 = vsyncadd (%p1564_p11), [#allocation8], 4294966528 }
  0x83   : > { %1172 = dma.done.wait (%p1565_p13), [#allocation11], 512   ;;  %p1566_p6 = pmov %p1563_p8 }
  0x84   : > { %vm350_vm0 = vcmask 261120   ;;  %v344_v0 = vld [vmem:[#allocation9] sm:$0xff]  ;;  %v345_v1 = vld [vmem:[#allocation9 + $0x8] sm:$0xff]  ;;  %v346_v2 = vld [vmem:[#allocation9 + $0x10] sm:$0xff]  ;;  %v1201_v8 = vmov 0.0|0.0   ;;  %vm1202_vm1 = vmmov 0  }
  0x85   : > { %1174 = vsyncadd (%p1566_p6), [#allocation11], 4294966784  ;;  %v892_v3 = vpack.c.bf16 %v345_v1, %v344_v0  ;;  %v347_v4 = vld [vmem:[#allocation9 + $0x18] sm:$0xff]  ;;  %v342_v5 = vld [vmem:[%s298_s20] sm:$0xff]  ;;  %900 = vmatprep.subr.bf16.mxu1 %v1201_v8  ;;  %v1203_v9 = vmov 0.0   ;;  %v1204_v11 = vmov 0  }
  0x86   : > { %v896_v6 = vpack.c.bf16 %v347_v4, %v346_v2  ;;  %864 = vmatprep.mubr.msk.f32.mxu0 %vm350_vm0, %v342_v5  ;;  %v343_v7 = vld [vmem:[%s298_s20 + $0x8] sm:$0xff]  ;;  %871 = vmatprep.mubr.msk.f32.mxu1 %vm1202_vm1, %v1203_v9  ;;  %v348_v13 = vld [vmem:[#allocation7] sm:$0xff]  ;;  %vm902_vm2 = vmpackc.low %vm350_vm0, %vm350_vm0  ;;  %vm524_vm3 = vcmask 130048   ;;  %s825_s10 = sshll.u32 %s1451_s17, 3  ;;  %s835_s12 = sshll.u32 %s1267_s28, 7 }
  0x87   : > { %893 = vmatprep.subr.bf16.mxu0 %v892_v3  ;;  %v439_v10 = vld [vmem:[%s1544_s4] sm:$0xff]  ;;  %996 = vset.pattern.permute.xlu0 %v1204_v11  ;;  %v905_v34 = vpack.c.bf16 %v343_v7, %v342_v5  ;;  %v613_v38 = vld [vmem:[#allocation10] sm:$0xff]  ;;  %v614_v39 = vld [vmem:[#allocation10 + $0x8] sm:$0xff]  ;;  %s340_s21 = scalar_lea.vmem [#allocation12], %s825_s10  ;;  %s1496_s11 = scalar_lea.hbm %s1547_s7, %s835_s12 }
  0x88   : > { %895 = vmatpush3.bf16.msra.mxu0 %v892_v3  ;;  %442 = vperm.xlu0 %996, %v439_v10   ;;  %v349_v12 = vld [vmem:[#allocation7 + $0x8] sm:$0xff]  ;;  %v908_v40 = vpack.c.bf16 %v614_v39, %v613_v38  ;;  %v615_v41 = vld [vmem:[#allocation10 + $0x10] sm:$0xff]  ;;  %s712_s16 = sshll.u32 %s340_s21, 4  ;;  %s699_s20 = scalar_lea.sflag [#allocation6], %s1451_s17  ;;  %s1498_s16 = int_to_ptr.vmem [resolvable:$true] %s712_s16 }
  0x89   : > { %897 = vmatprep.subr.bf16.mxu0 %v896_v6  ;;  %v436_v23 = vld [vmem:[%s1543_s3] sm:$0xff]  ;;  %s1119_s30 = scalar_lea.vmem %s1498_s16, 128  ;;  %s1205_s28 = smov [#allocation12]  }
  0x8a   : > { %v616_v42 = vld [vmem:[#allocation10 + $0x18] sm:$0xff]  ;;  %p1120_p10 = scmp.ne.s32.totalorder %s1498_s16, %s1119_s30  ;;  %s1123_s9 = sshll.u32 %s1205_s28, 4  ;;  %s1124_s9 = int_to_ptr.vmem [resolvable:$false] %s1123_s9 }
  0x8b   : > { %v911_v43 = vpack.c.bf16 %v616_v42, %v615_v41  ;;  %v832_v47 = vld [vmem:[%s1546_s6] ss:$0 sm:$0xff]  ;;  %s1125_s13 = scalar_lea.vmem %s1124_s9, 256  ;;  %p1126_p12 = scmp.lt.s32.totalorder %s1498_s16, %s1124_s9 }
  0x8c   : > { %899 = vmatpush3.bf16.msra.mxu0 %v896_v6  ;;  %p1121_p3 = pnand %p1120_p10, %p1400_p5  ;;  %p1127_p1 = scmp.lt.s32.totalorder %s1125_s13, %s1119_s30 }
  0x8d   : > { %904 = vmatprep.subr.bf16.mxu0 %v1201_v8 }
  0x8e   : > { %p1122_p7 = pneg %p1121_p3  ;;  %p1128_p2 = por %p1127_p1, %p1126_p12 }
  0x8f   : > { %865 = vmatmul.mubr.msk.f32.vlgmr.msra.gmra.mrb[0].mxu0 %vm350_vm0, %v343_v7 }
  0x90   : > { %878 = vmatprep.mubr.msk.f32.mxu0 %vm1202_vm1, %v1203_v9  ;;  %906 = vmatpush3.bf16.msra.mxu0 %v905_v34  ;;  %p1129_p4 = pnand %p1128_p2, %p1122_p7 }
 0x107   : > { %v443_v24 = vpop.permute.xlu0 %442 }
 0x162   : > { %v866_v14 = vpop.f32.mrb[0].mxu0 }
 0x163   : > { %v429_v15 = vadd.f32 %v866_v14, %v349_v12  ;;  %v423_v16 = vpop.f32.mrb[1].mxu0 }
 0x164   : > { %v424_v17 = vadd.f32 %v423_v16, %v348_v13 }
 0x165   : > { %997 = vtanh.f32 %v429_v15 }
 0x166   : > { %999 = vtanh.f32 %v424_v17 }
 0x16f   : > { %v998_v18 = vpop.eup %997 }
 0x170   : > { %v1000_v19 = vpop.eup %999  ;;  %435 = vst.msk [vmem:[#allocation2 + $0x8] sm:$0xff] %vm350_vm0, %v998_v18 }
 0x171   : > { %434 = vst.msk [vmem:[#allocation2] sm:$0xff] %vm350_vm0, %v1000_v19 }
 0x177   : > { %v438_v20 = vld [vmem:[#allocation2 + $0x8] sm:$0xff] }
 0x178   : > { %v437_v21 = vld [vmem:[#allocation2] sm:$0xff] }
 0x179   : > { %v901_v22 = vpack.c.bf16 %v438_v20, %v437_v21 }
 0x17b   : > { %903 = vmatpush3.bf16.xpose.msk.msra.mxu1 %vm902_vm2, %v901_v22 }
 0x17c   : > { %907 = vmatprep.subr.bf16.mxu1 %v1201_v8 }
 0x182   : > { %872 = vmatmul.mubr.msk.f32.vlgmr.msra.gmra.mrb[0].mxu1 %vm350_vm0, %v436_v23 }
 0x183   : > { %889 = vmatprep.mubr.msk.f32.mxu1 %vm1202_vm1, %v1203_v9  ;;  %909 = vmatpush3.bf16.msra.mxu1 %v908_v40 }
 0x184   : > { %910 = vmatprep.subr.bf16.mxu1 %v1201_v8 }
 0x187   : > { %912 = vmatpush3.bf16.msra.mxu1 %v911_v43 }
 0x255   : > { %v520_v25 = vpop.f32.mrb[0].mxu1 }
 0x256   : > { %v521_v26 = vadd.f32 %v520_v25, %v443_v24  ;;  %v873_v27 = vpop.f32.mrb[1].mxu1 }
 0x258   : > { %v525_v28 = vsel %vm524_vm3, %v521_v26, -inf }
 0x259   : > { %526 = vmax.xlane.f32.xlu0 %v525_v28 }
 0x2e6   : > { %v527_v29 = vpop.xlane.xlu0 %526 }
 0x2e7   : > { %v528_v30 = vsub.f32 %v521_v26, %v527_v29 }
 0x2e9   : > { %v529_v31 = vmul.f32 1.442695, %v528_v30 }
 0x2eb   : > { %1001 = vpow2.f32 %v529_v31 }
 0x2f5   : > { %v1002_v32 = vpop.eup %1001 }
 0x2f6   : > { %v531_v33 = vsel %vm524_vm3, %v1002_v32, 0.0 }
 0x2f7   : > { %532 = vadd.xlane.f32.xlu1 %v531_v33 }
 0x384   : > { %v533_v35 = vpop.xlane.xlu1 %532 }
 0x385   : > { %1003 = vrcp.f32 %v533_v35 }
 0x38f   : > { %v1004_v36 = vpop.eup %1003 }
 0x390   : > { %v535_v37 = vmul.f32 %v1004_v36, %v1002_v32 }
 0x392   : > { %879 = vmatmul.mubr.msk.f32.vlgmr.msra.gmra.mrb[2].mxu0 %vm524_vm3, %v535_v37 }
 0x465   : > { %v607_v44 = vpop.f32.mrb[2].mxu0 }
 0x466   : > { %611 = vst.msk [vmem:[#allocation3] sm:$0xff] %vm350_vm0, %v607_v44  ;;  %v880_v45 = vpop.f32.mrb[3].mxu0 }
 0x46d   : > { %v612_v46 = vld [vmem:[#allocation3] sm:$0xff] }
 0x46e   : > { %890 = vmatmul.mubr.msk.f32.vlgmr.msra.gmra.mrb[2].mxu1 %vm350_vm0, %v612_v46 }
 0x541   : > { %v693_v48 = vpop.f32.mrb[2].mxu1 }
 0x542   : > { %v694_v49 = vadd.f32 %v832_v47, %v693_v48  ;;  %v891_v50 = vpop.f32.mrb[3].mxu1 }
 0x544   : > { %697 = vst [vmem:[%s340_s21] sm:$0xff] %v694_v49 }
 0x545   : > { %1132 = shalt.err (!%p1129_p4)
}
 0x546   : > { %s1133_s17 = scalar_lea.hbm %s1496_s11, 128  ;;  %s1137_s14 = scalar_lea.hbm %s1547_s7, 256 }
 0x547   : > { %p1134_p9 = scmp.ne.s32.totalorder %s1496_s11, %s1133_s17  ;;  %p1138_p11 = scmp.lt.u32.totalorder %s1496_s11, %s1547_s7 }
 0x548   : > { %p1139_p13 = scmp.lt.u32.totalorder %s1137_s14, %s1133_s17  ;;  %p1141_p10 = scmp.lt.u32.totalorder %s1133_s17, %s1496_s11 }
 0x549   : > { %p1135_p0 = pnand %p1134_p9, %p1400_p5 }
 0x54a   : > { %p1140_p6 = por %p1139_p13, %p1138_p11 }
 0x54b   : > { %p1136_p8 = pneg %p1135_p0 }
 0x54c   : > { %p1142_p3 = por %p1141_p10, %p1140_p6 }
 0x54e   : > { %p1143_p7 = pnand %p1142_p3, %p1136_p8 }
 0x550   : > { %1146 = shalt.err (!%p1143_p7)
}
 0x551   : > { %927 = dma.vmem_to_hbm [thread:$0]  (%p1400_p5), %s1498_s16, 128, %s1496_s11, %s699_s20  }
 0x552 PF: > { %s1567_s21 = sld [smem:[#allocation17_spill]]  ;;  %s724_s29 = sand.u32 1, %s1181_s24  }
 0x553   : > { %p1569_p1 = scmp.ge.s32.totalorder %s1193_s27, 2  ;;  %s725_s23 = scalar_lea.sflag [#allocation6], %s724_s29 }
 0x558   : > { %p1568_p12 = scmp.ne.s32.totalorder %s1567_s21, 0 }
 0x55a   : > { %p944_p2 = pnand %p1569_p1, %p1568_p12 }
 0x55c   : > { %1176 = dma.done.wait (!%p944_p2), %s725_s23, 128  }
 0x55d   : > { %1178 = vsyncadd (!%p944_p2), %s725_s23, 4294967168  ;;  %p22_p4 = scmp.ge.s32.totalorder %s1386_s22, 4   ;;  %s1570_s24 = smov %s1185_s25 }
 0x55e   : > { %s1571_s25 = smov %s1189_s26  ;;  %s1572_s26 = smov %s1396_s18 }
 0x55f   : > { %s1573_s27 = smov %s1386_s22  ;;  %24 = sbr.rel (!%p22_p4) target bundleno = 7 (0x7), region = 105 }
 0x566   :  { %730 = vsyncpa [#allocation5], 1 }
 0x567   :  { %732 = vsyncpa [#allocation5 + $0x1], 1 }
 0x568   :  { %733 = vsyncpa [#allocation8], 1 }
 0x569   :  { %734 = vsyncpa [#allocation11], 1 }
 0x56a   :  { %735 = vsyncpa [#allocation6], 1 }
 0x56b   :  { %737 = vsyncpa [#allocation6 + $0x1], 1 }

</bundles_post_ra>
